<compile_context>
chip_gen: v6e
topology: v6e:2x2x1
jax: 0.10.0
libtpu: 0.0.40
codegen_flags: <defaults>
</compile_context>

<pallas_src>
import functools

import jax
import jax.numpy as jnp
from jax.experimental import pallas as pl
from jax.experimental.pallas import tpu as pltpu


def _fs_kernel(x_ref, w_ref, b_ref, o_ref, acc_ref, *, inv_n):
    """Grid: (batch tiles ["parallel"], row tiles ["arbitrary" reduction])."""
    n = pl.program_id(1)

    @pl.when(n == 0)
    def _init():
        acc_ref[...] = jnp.zeros_like(acc_ref)

    # Partial sum over this row tile, accumulated in f32 without materializing
    # an f32 copy of the whole (TB, TN, L) block.
    acc_ref[...] += jnp.sum(x_ref[...], axis=1, dtype=jnp.float32)   # (TB, L)

    @pl.when(n == pl.num_programs(1) - 1)
    def _finalize():
        pooled = acc_ref[...] * inv_n                      # mean over H*W
        # w_ref is the (D, O) weight tiled `fold` times along its contraction
        # dim, so this matmul also folds the lane-packed D segments back down.
        scores = jnp.dot(pooled, w_ref[...].astype(jnp.float32),
                         preferred_element_type=jnp.float32)
        scores = scores + b_ref[...].astype(jnp.float32)   # (TB, O)
        m = jnp.max(scores, axis=-1, keepdims=True)
        e = jnp.exp(scores - m)
        denom = jnp.sum(e, axis=-1, keepdims=True)
        o_ref[...] = (e * pl.reciprocal(denom, approx=True)).astype(o_ref.dtype)


def _choose_row_tile(nr, max_rows):
    """Largest row tile <= max_rows that is a multiple of 8 and divides nr."""
    if nr <= max_rows:
        return nr
    t = (max_rows // 8) * 8
    while t >= 8:
        if nr % t == 0:
            return t
        t -= 8
    return nr   # no clean divisor: one full block (correct, just less tiled)


def _choose_batch_tile(b):
    if b <= 128:
        return b
    for t in (128, 64, 32, 16, 8):
        if b % t == 0:
            return t
    return b


def feature_selection_layer(x, weight, bias, *, target_rows=1024):
    """x: (B, H, W, D); weight: (D, O); bias: (O,).  Returns softmax (B, O)."""
    B, H, W, D = x.shape
    O = weight.shape[1]
    N = H * W

    # Lane-dense packing: fold consecutive spatial rows so the last dim is 128
    # when D < 128 (4x better lane/VMEM occupancy at D=32).
    fold = 1
    if D < 128 and 128 % D == 0:
        fold = 128 // D
        while fold > 1 and N % fold != 0:
            fold //= 2
    NR = N // fold
    L = D * fold

    x_flat = x.reshape(B, NR, L)                 # layout-only reshape
    w_packed = jnp.tile(weight, (fold, 1))       # (L, O): undoes the fold
    b2d = bias.reshape(1, O)

    TB = _choose_batch_tile(B)
    itemsize = x_flat.dtype.itemsize
    # Keep the double-buffered input tile well inside scoped VMEM on every
    # generation (v7x: 64 MiB physical / 32 MiB default scoped).
    input_budget = 12 * 1024 * 1024
    max_rows = max(8, min(target_rows, input_budget // (2 * TB * L * itemsize)))
    TN = _choose_row_tile(NR, max_rows)

    grid = (B // TB, NR // TN)

    tile_bytes = (2 * TB * TN * L * itemsize           # double-buffered x tile
                  + TB * L * 4                         # f32 accumulator
                  + 2 * (L * O + O) * w_packed.dtype.itemsize
                  + 2 * TB * O * x.dtype.itemsize)
    vmem_limit = int(min(64 * 1024 * 1024, max(16 * 1024 * 1024, 4 * tile_bytes)))

    cost = pl.CostEstimate(
        flops=B * N * D + 2 * B * L * O + 8 * B * O,
        transcendentals=B * O + B,
        bytes_accessed=(x_flat.size * itemsize
                        + w_packed.size * w_packed.dtype.itemsize
                        + O * bias.dtype.itemsize
                        + B * O * x.dtype.itemsize),
    )

    kernel = functools.partial(_fs_kernel, inv_n=1.0 / float(N))

    return pl.pallas_call(
        kernel,
        out_shape=jax.ShapeDtypeStruct((B, O), x.dtype),
        grid_spec=pltpu.PrefetchScalarGridSpec(
            num_scalar_prefetch=0,
            grid=grid,
            in_specs=[
                pl.BlockSpec((TB, TN, L), lambda b, n: (b, n, 0)),
                pl.BlockSpec((L, O), lambda b, n: (0, 0)),   # resident weight
                pl.BlockSpec((1, O), lambda b, n: (0, 0)),   # resident bias
            ],
            out_specs=pl.BlockSpec((TB, O), lambda b, n: (b, 0)),
            scratch_shapes=[pltpu.VMEM((TB, L), jnp.float32)],
        ),
        compiler_params=pltpu.CompilerParams(
            dimension_semantics=("parallel", "arbitrary"),
            vmem_limit_bytes=vmem_limit,
        ),
        cost_estimate=cost,
    )(x_flat, w_packed, b2d)


if __name__ == "__main__":
    # Small shapes consistent with the module: B=2, spatial=16x16, D=32, O=2.
    B, H, W, D, O = 2, 16, 16, 32, 2

    key = jax.random.PRNGKey(0)
    kx, kw, kb = jax.random.split(key, 3)

    x = jax.random.normal(kx, (B, H, W, D), dtype=jnp.float32)

    # Deterministic nn.Linear-style init: U(-1/sqrt(D), 1/sqrt(D))
    bound = 1.0 / (D ** 0.5)
    weight = jax.random.uniform(kw, (D, O), minval=-bound, maxval=bound,
                                dtype=jnp.float32)
    bias = jax.random.uniform(kb, (O,), minval=-bound, maxval=bound,
                              dtype=jnp.float32)

    # Default (largest-fitting) tile.
    out = jax.block_until_ready(feature_selection_layer(x, weight, bias))
    # Small row tile -> multi-step reduction; exercises the accumulator path.
    out_multi = jax.block_until_ready(
        feature_selection_layer(x, weight, bias, target_rows=16))

    # Reference check in plain JAX (same math as the PyTorch forward).
    pooled = x.mean(axis=(1, 2))
    ref = jax.nn.softmax(pooled @ weight + bias, axis=1)
    assert out.shape == (B, O)
    # Tolerance accommodates the approximate (EUP) reciprocal in the softmax.
    assert jnp.allclose(out, ref, atol=5e-3, rtol=5e-3)
    assert jnp.allclose(out_multi, ref, atol=5e-3, rtol=5e-3)

    print("KERNEL_OK")
</pallas_src>

<mosaic_0001>
module attributes {stable_mosaic.version = 11 : i64} {
  func.func @_fs_kernel(%arg0: i32, %arg1: i32, %arg2: memref<2x64x128xf32, #tpu.memory_space<vmem>>, %arg3: memref<128x2xf32, #tpu.memory_space<vmem>>, %arg4: memref<1x2xf32, #tpu.memory_space<vmem>>, %arg5: memref<2x2xf32, #tpu.memory_space<vmem>>, %arg6: memref<2x128xf32, #tpu.memory_space<vmem>>) attributes {dimension_semantics = [#tpu.dimension_semantics<parallel>, #tpu.dimension_semantics<arbitrary>], iteration_bounds = array<i64: 1, 1>, scalar_prefetch = 0 : i64, scratch_operands = 1 : i64, tpu.core_type = #tpu.core_type<tc>, window_params = [{transform_indices = @transform_0, window_bounds = array<i64: 2, 64, 128>}, {pipeline_mode = #tpu.pipeline_mode<synchronous>, transform_indices = @transform_1, window_bounds = array<i64: 128, 2>}, {pipeline_mode = #tpu.pipeline_mode<synchronous>, transform_indices = @transform_2, window_bounds = array<i64: 1, 2>}, {transform_indices = @transform_3, window_bounds = array<i64: 2, 2>}]} {
    %c0_i32 = arith.constant 0 : i32
    %0 = arith.cmpi eq, %arg1, %c0_i32 : i32
    %1 = arith.extui %0 : i1 to i32
    %c0_i32_0 = arith.constant 0 : i32
    %2 = arith.cmpi ne, %1, %c0_i32_0 : i32
    scf.if %2 {
      %cst_9 = arith.constant 0.000000e+00 : f32
      %11 = vector.broadcast %cst_9 : f32 to vector<2x128xf32>
      %c0_10 = arith.constant 0 : index
      %c0_11 = arith.constant 0 : index
      %12 = vector.load %arg6[%c0_10, %c0_11] : memref<2x128xf32, #tpu.memory_space<vmem>>, vector<2x128xf32>
      tpu.vector_store %arg6[%c0_10, %c0_11], %11 {strides = array<i32>} : memref<2x128xf32, #tpu.memory_space<vmem>>, vector<2x128xf32>,
    } else {
    }
    %c0 = arith.constant 0 : index
    %c0_1 = arith.constant 0 : index
    %3 = vector.load %arg6[%c0, %c0_1] : memref<2x128xf32, #tpu.memory_space<vmem>>, vector<2x128xf32>
    %c0_2 = arith.constant 0 : index
    %c0_3 = arith.constant 0 : index
    %c0_4 = arith.constant 0 : index
    %4 = vector.load %arg2[%c0_2, %c0_3, %c0_4] : memref<2x64x128xf32, #tpu.memory_space<vmem>>, vector<2x64x128xf32>
    %cst = arith.constant dense<0.000000e+00> : vector<2x128xf32>
    %5 = vector.multi_reduction <add>, %4, %cst [1] : vector<2x64x128xf32> to vector<2x128xf32>
    %6 = arith.addf %3, %5 : vector<2x128xf32>
    %c0_5 = arith.constant 0 : index
    %c0_6 = arith.constant 0 : index
    %7 = vector.load %arg6[%c0_5, %c0_6] : memref<2x128xf32, #tpu.memory_space<vmem>>, vector<2x128xf32>
    tpu.vector_store %arg6[%c0_5, %c0_6], %6 {strides = array<i32>} : memref<2x128xf32, #tpu.memory_space<vmem>>, vector<2x128xf32>,
    %c0_i32_7 = arith.constant 0 : i32
    %8 = arith.cmpi eq, %arg1, %c0_i32_7 : i32
    %9 = arith.extui %8 : i1 to i32
    %c0_i32_8 = arith.constant 0 : i32
    %10 = arith.cmpi ne, %9, %c0_i32_8 : i32
    scf.if %10 {
      %c0_9 = arith.constant 0 : index
      %c0_10 = arith.constant 0 : index
      %11 = vector.load %arg6[%c0_9, %c0_10] : memref<2x128xf32, #tpu.memory_space<vmem>>, vector<2x128xf32>
      %cst_11 = arith.constant 3.906250e-03 : f32
      %12 = vector.broadcast %cst_11 : f32 to vector<2x128xf32>
      %13 = arith.mulf %11, %12 : vector<2x128xf32>
      %c0_12 = arith.constant 0 : index
      %c0_13 = arith.constant 0 : index
      %14 = vector.load %arg3[%c0_12, %c0_13] : memref<128x2xf32, #tpu.memory_space<vmem>>, vector<128x2xf32>
      %cst_14 = arith.constant dense<0.000000e+00> : vector<2x2xf32>
      %15 = tpu.matmul %13, %14, %cst_14 {dimension_numbers = #tpu.dot_dimension_numbers<[1], [0], [0], [1], [0, 0, 1, 1], [], []>} : vector<2x128xf32>, vector<128x2xf32>, vector<2x2xf32> -> vector<2x2xf32>
      %c0_15 = arith.constant 0 : index
      %c0_16 = arith.constant 0 : index
      %16 = vector.load %arg4[%c0_15, %c0_16] : memref<1x2xf32, #tpu.memory_space<vmem>>, vector<1x2xf32>
      %17 = vector.broadcast %16 : vector<1x2xf32> to vector<2x2xf32>
      %18 = arith.addf %15, %17 : vector<2x2xf32>
      %cst_17 = arith.constant dense<0xFF800000> : vector<2xf32>
      %19 = vector.multi_reduction <maximumf>, %18, %cst_17 [1] : vector<2x2xf32> to vector<2xf32>
      %20 = vector.shape_cast %19 : vector<2xf32> to vector<2x1xf32>
      %21 = vector.broadcast %20 : vector<2x1xf32> to vector<2x2xf32>
      %22 = arith.subf %18, %21 : vector<2x2xf32>
      %23 = math.exp %22 : vector<2x2xf32>
      %cst_18 = arith.constant dense<0.000000e+00> : vector<2xf32>
      %24 = vector.multi_reduction <add>, %23, %cst_18 [1] : vector<2x2xf32> to vector<2xf32>
      %25 = vector.shape_cast %24 : vector<2xf32> to vector<2x1xf32>
      %26 = tpu.reciprocal %25 {approx = true} : vector<2x1xf32> -> vector<2x1xf32>
      %27 = vector.broadcast %26 : vector<2x1xf32> to vector<2x2xf32>
      %28 = arith.mulf %23, %27 : vector<2x2xf32>
      %c0_19 = arith.constant 0 : index
      %c0_20 = arith.constant 0 : index
      %29 = vector.load %arg5[%c0_19, %c0_20] : memref<2x2xf32, #tpu.memory_space<vmem>>, vector<2x2xf32>
      tpu.vector_store %arg5[%c0_19, %c0_20], %28 {strides = array<i32>} : memref<2x2xf32, #tpu.memory_space<vmem>>, vector<2x2xf32>,
    } else {
    }
    return
  }
  func.func @transform_0(%arg0: i32, %arg1: i32) -> (i32, i32, i32) {
    %c0_i32 = arith.constant 0 : i32
    %c0_i32_0 = arith.constant 0 : i32
    return %arg0, %arg1, %c0_i32 : i32, i32, i32
  }
  func.func @transform_1(%arg0: i32, %arg1: i32) -> (i32, i32) {
    %c0_i32 = arith.constant 0 : i32
    %c0_i32_0 = arith.constant 0 : i32
    %c0_i32_1 = arith.constant 0 : i32
    return %c0_i32, %c0_i32_0 : i32, i32
  }
  func.func @transform_2(%arg0: i32, %arg1: i32) -> (i32, i32) {
    %c0_i32 = arith.constant 0 : i32
    %c0_i32_0 = arith.constant 0 : i32
    %c0_i32_1 = arith.constant 0 : i32
    return %c0_i32, %c0_i32_0 : i32, i32
  }
  func.func @transform_3(%arg0: i32, %arg1: i32) -> (i32, i32) {
    %c0_i32 = arith.constant 0 : i32
    %c0_i32_0 = arith.constant 0 : i32
    return %arg0, %c0_i32 : i32, i32
  }
}

</mosaic_0001>

<bundles_post_ra>
// kernel: tpu_custom_call.1
= control target key start
LH: loop header
LB: loop body
LE: loop exit
PB: predicated region body
PF: predicated region fallthrough
CT: control target
= control target key end

     0   :  { %v277_v1 = vmov 0.0   ;;  %vm278_vm0 = vmmov 0   ;;  %s423_s0 = inlined_call_operand.vmem [shape: f32[2,64,128], index: 0, kind: input, shape index: {}]   ;;  %s424_s1 = inlined_call_operand.vmem [shape: f32[128,2], index: 1, kind: input, shape index: {}]   ;;  %s425_s2 = inlined_call_operand.vmem [shape: f32[1,2], index: 2, kind: input, shape index: {}]   ;;  %s426_s3 = inlined_call_operand.hbm [shape: f32[2,2], index: 3, kind: output, shape index: {}]  }
   0x1   :  { %v90_v0 = vld [vmem:[%s424_s1 + $0x78] sm:$0xff]  ;;  %213 = vmatprep.subr.mxu0 %v277_v1  ;;  %19 = vst [vmem:[#allocation2] sm:$0x3] %v277_v1  ;;  %v89_v2 = vld [vmem:[%s424_s1 + $0x70] sm:$0xff]  ;;  %245 = vmatprep.mubr.msk.f32.mxu0 %vm278_vm0, %v277_v1  ;;  %v88_v3 = vld [vmem:[%s424_s1 + $0x68] sm:$0xff] }
   0x2   :  { %214 = vmatpush3.msra.mxu0 %v90_v0  ;;  %v87_v4 = vld [vmem:[%s424_s1 + $0x60] sm:$0xff]  ;;  %v22_v6 = vld [vmem:[%s423_s0 + $0x8] sm:$0xff]  ;;  %v23_v7 = vld [vmem:[%s423_s0 + $0x10] sm:$0xff] }
   0x3   :  { %215 = vmatprep.subr.mxu0 %v277_v1  ;;  %v21_v5 = vld [vmem:[%s423_s0] sm:$0xff]  ;;  %v86_v9 = vld [vmem:[%s424_s1 + $0x58] sm:$0xff]  ;;  %v30_v12 = vld [vmem:[%s423_s0 + $0x48] sm:$0xff] }
   0x4   :  { %216 = vmatpush3.msra.mxu0 %v89_v2  ;;  %v37_v8 = vadd.f32 %v22_v6, %v21_v5  ;;  %v24_v10 = vld [vmem:[%s423_s0 + $0x18] sm:$0xff]  ;;  %v29_v11 = vld [vmem:[%s423_s0 + $0x40] sm:$0xff]  ;;  %v85_v14 = vld [vmem:[%s424_s1 + $0x50] sm:$0xff] }
   0x5   :  { %217 = vmatprep.subr.mxu0 %v277_v1  ;;  %v25_v15 = vld [vmem:[%s423_s0 + $0x20] sm:$0xff]  ;;  %v31_v16 = vld [vmem:[%s423_s0 + $0x50] sm:$0xff]  ;;  %v50_v17 = vadd.f32 %v30_v12, %v29_v11  ;;  %v32_v18 = vld [vmem:[%s423_s0 + $0x58] sm:$0xff] }
   0x6   :  { %218 = vmatpush3.msra.mxu0 %v88_v3  ;;  %v38_v13 = vadd.f32 %v37_v8, %v23_v7  ;;  %v84_v20 = vld [vmem:[%s424_s1 + $0x48] sm:$0xff] }
   0x7   :  { %219 = vmatprep.subr.mxu0 %v277_v1  ;;  %v26_v21 = vld [vmem:[%s423_s0 + $0x28] sm:$0xff]  ;;  %v51_v22 = vadd.f32 %v50_v17, %v31_v16 }
   0x8   :  { %220 = vmatpush3.msra.mxu0 %v87_v4  ;;  %v39_v19 = vadd.f32 %v38_v13, %v24_v10 }
   0x9   :  { %221 = vmatprep.subr.mxu0 %v277_v1 }
   0xa   :  { %222 = vmatpush3.msra.mxu0 %v86_v9 }
   0xb   :  { %223 = vmatprep.subr.mxu0 %v277_v1 }
   0xc   :  { %8 = vsyncpa [#allocation4], 0  ;;  %224 = vmatpush3.msra.mxu0 %v85_v14  ;;  %v33_v23 = vld [vmem:[%s423_s0 + $0x60] sm:$0xff]  ;;  %v40_v24 = vadd.f32 %v39_v19, %v25_v15  ;;  %v27_v26 = vld [vmem:[%s423_s0 + $0x30] sm:$0xff]  ;;  %v52_v27 = vadd.f32 %v51_v22, %v32_v18  ;;  %vm65_vm1 = vcmask 1041409   ;;  %vm168_vm2 = vcmask 9216  }
   0xd   :  { %225 = vmatprep.subr.mxu0 %v277_v1  ;;  %v83_v25 = vld [vmem:[%s424_s1 + $0x40] sm:$0xff]  ;;  %v34_v28 = vld [vmem:[%s423_s0 + $0x68] sm:$0xff]  ;;  %v82_v30 = vld [vmem:[%s424_s1 + $0x38] sm:$0xff] }
   0xe   :  { %226 = vmatpush3.msra.mxu0 %v84_v20  ;;  %v41_v29 = vadd.f32 %v40_v24, %v26_v21  ;;  %v28_v31 = vld [vmem:[%s423_s0 + $0x38] sm:$0xff]  ;;  %v53_v32 = vadd.f32 %v52_v27, %v33_v23  ;;  %v35_v33 = vld [vmem:[%s423_s0 + $0x70] sm:$0xff]  ;;  %v80_v39 = vld [vmem:[%s424_s1 + $0x28] sm:$0xff] }
   0xf   :  { %227 = vmatprep.subr.mxu0 %v277_v1  ;;  %v81_v35 = vld [vmem:[%s424_s1 + $0x30] sm:$0xff]  ;;  %v36_v37 = vld [vmem:[%s423_s0 + $0x78] sm:$0xff]  ;;  %v79_v42 = vld [vmem:[%s424_s1 + $0x20] sm:$0xff] }
  0x10   :  { %228 = vmatpush3.msra.mxu0 %v83_v25  ;;  %v42_v34 = vadd.f32 %v41_v29, %v27_v26  ;;  %v54_v36 = vadd.f32 %v53_v32, %v34_v28  ;;  %v78_v45 = vld [vmem:[%s424_s1 + $0x18] sm:$0xff]  ;;  %v77_v48 = vld [vmem:[%s424_s1 + $0x10] sm:$0xff]  ;;  %v76_v51 = vld [vmem:[%s424_s1 + $0x8] sm:$0xff] }
  0x11   :  { %229 = vmatprep.subr.mxu0 %v277_v1  ;;  %v75_v54 = vld [vmem:[%s424_s1] sm:$0xff]  ;;  %s279_s1 = smov [#allocation3]  }
  0x12   :  { %230 = vmatpush3.msra.mxu0 %v82_v30  ;;  %v43_v38 = vadd.f32 %v42_v34, %v28_v31  ;;  %v55_v40 = vadd.f32 %v54_v36, %v35_v33  ;;  %v20_v58 = vld [vmem:[#allocation2] sm:$0x3]  ;;  %s187_s23 = sshll.u32 %s279_s1, 4  ;;  %s188_s23 = int_to_ptr.vmem [resolvable:$true] %s187_s23 }
  0x13   :  { %231 = vmatprep.subr.mxu0 %v277_v1  ;;  %v195_v0 = vld [vmem:[%s425_s2] ss:$0 sm:$0xff]  ;;  %s255_s2 = scalar_lea.vmem %s188_s23, 32  ;;  %p260_p1 = scmp.lt.s32.totalorder %s188_s23, %s188_s23 }
  0x14   :  { %232 = vmatpush3.msra.mxu0 %v81_v35  ;;  %v44_v41 = vrot.slane %v43_v38, 4  ;;  %v56_v43 = vadd.f32 %v55_v40, %v36_v37  ;;  %p256_p0 = scmp.ne.s32.totalorder %s188_s23, %s255_s2  ;;  %p261_p2 = scmp.lt.s32.totalorder %s255_s2, %s255_s2 }
  0x15   :  { %233 = vmatprep.subr.mxu0 %v277_v1 }
  0x16   :  { %234 = vmatpush3.msra.mxu0 %v80_v39  ;;  %v45_v44 = vadd.f32 %v44_v41, %v43_v38  ;;  %v57_v46 = vrot.slane %v56_v43, 4  ;;  %p262_p3 = por %p261_p2, %p260_p1 }
  0x17   :  { %235 = vmatprep.subr.mxu0 %v277_v1 }
  0x18   :  { %236 = vmatpush3.msra.mxu0 %v79_v42  ;;  %v46_v47 = vrot.slane %v45_v44, 2  ;;  %v58_v49 = vadd.f32 %v57_v46, %v56_v43  ;;  %p263_p4 = pnand %p262_p3, %p256_p0 }
  0x19   :  { %237 = vmatprep.subr.mxu0 %v277_v1 }
  0x1a   :  { %238 = vmatpush3.msra.mxu0 %v78_v45  ;;  %v47_v50 = vadd.f32 %v46_v47, %v45_v44  ;;  %v59_v52 = vrot.slane %v58_v49, 2 }
  0x1b   :  { %239 = vmatprep.subr.mxu0 %v277_v1 }
  0x1c   :  { %240 = vmatpush3.msra.mxu0 %v77_v48  ;;  %v48_v53 = vrot.slane %v47_v50, 1  ;;  %v60_v55 = vadd.f32 %v59_v52, %v58_v49 }
  0x1d   :  { %241 = vmatprep.subr.mxu0 %v277_v1 }
  0x1e   :  { %242 = vmatpush3.msra.mxu0 %v76_v51  ;;  %v49_v56 = vadd.f32 %v48_v53, %v47_v50  ;;  %v61_v57 = vrot.slane %v60_v55, 1 }
  0x1f   :  { %243 = vmatprep.subr.mxu0 %v277_v1 }
  0x20   :  { %244 = vmatpush3.msra.mxu0 %v75_v54  ;;  %v62_v59 = vadd.f32 %v61_v57, %v60_v55 }
  0x22   :  { %v66_v60 = vsel %vm65_vm1, %v62_v59, %v49_v56 }
  0x23   :  { %v68_v61 = vadd.f32 %v66_v60, %v20_v58 }
  0x25   :  { %69 = vst [vmem:[#allocation2] sm:$0x3] %v68_v61 }
  0x2c   :  { %v73_v62 = vld [vmem:[#allocation2] sm:$0x3] }
  0x2d   :  { %v74_v63 = vmul.f32 0.00390625, %v73_v62 }
  0x2f   :  { %246 = vmatmul.mubr.f32.vlgmr.msra.gmra.mxu0 %v74_v63 }
  0xef   :  { %v164_v2 = vpop.f32.mrf.mxu0 }
  0xf0   :  { %v165_v3 = vadd.f32 %v195_v0, %v164_v2 }
  0xf1   :  { %v247_v1 = vpop.f32.mrf.mxu0 }
  0xf2   :  { %v169_v4 = vsel %vm168_vm2, %v165_v3, -inf }
  0xf3   :  { %170 = vmax.xlane.f32.xlu0 %v169_v4 }
 0x17c   :  { %v171_v5 = vpop.xlane.xlu0 %170 }
 0x17d   :  { %v172_v6 = vsub.f32 %v165_v3, %v171_v5 }
 0x17f   :  { %v173_v7 = vmul.f32 1.442695, %v172_v6 }
 0x181   :  { %251 = vpow2.f32 %v173_v7 }
 0x18e   :  { %v252_v8 = vpop.eup %251 }
 0x18f   :  { %v175_v9 = vsel %vm168_vm2, %v252_v8, 0.0 }
 0x190   :  { %176 = vadd.xlane.f32.xlu0 %v175_v9 }
 0x219   :  { %v177_v10 = vpop.xlane.xlu0 %176 }
 0x21a   :  { %253 = vrcp.f32 %v177_v10 }
 0x227   :  { %v254_v11 = vpop.eup %253 }
 0x228   :  { %v179_v12 = vmul.f32 %v254_v11, %v252_v8 }
 0x22a   :  { %180 = vst.msk [vmem:[#allocation3] sm:$0x3] %vm168_vm2, %v179_v12 }
 0x22b   :  { %266 = shalt.err (!%p263_p4)
}
 0x22c   :  { %190 = dma.vmem_to_hbm [thread:$0]  %s188_s23, 32, %s426_s3, [#allocation4]  }
 0x22d   :  { %275 = dma.done.wait [#allocation4], 32  }
 0x22e   :  { %276 = vsyncadd [#allocation4], 4294967264 }
 0x22f   :  { %194 = vsyncpa [#allocation4], 1 }

</bundles_post_ra>
